<compile_context>
chip_gen: v7x
topology: tpu7x:2x2x1
jax: 0.10.0
libtpu: 0.0.40
codegen_flags: <defaults>
</compile_context>

<pallas_src>
import functools

import jax
import jax.numpy as jnp
from jax.experimental import pallas as pl
from jax.experimental.pallas import tpu as pltpu

LN_EPS = 1e-5  # matches torch.nn.LayerNorm default


def _round_up(x, m):
    return ((x + m - 1) // m) * m


def _critic_kernel(layer_dims, head_dim, x_ref, w_ref, vec_ref, o_ref):
    """Single-invocation kernel; everything resident in VMEM.

    x_ref:   (B_pad, in0)            pre-concatenated [feature, action], batch zero-padded
    w_ref:   (L, IN_PAD, H_MAX)      per-layer weight matrices, zero-padded
    vec_ref: (3L + 2, H_MAX)         rows: [b_i, gamma_i, beta_i]*L, w_out_row, b_out
    o_ref:   (B_pad, 1)
    """
    x = x_ref[...].astype(jnp.float32)
    W = w_ref[...].astype(jnp.float32)   # tiny: load whole slab once
    V = vec_ref[...].astype(jnp.float32)

    num_hidden = len(layer_dims)

    for i, (d_in, d_out) in enumerate(layer_dims):
        w = W[i, :d_in, :d_out]                      # static slice of loaded slab
        b = V[3 * i + 0: 3 * i + 1, :d_out]          # (1, d_out)
        g = V[3 * i + 1: 3 * i + 2, :d_out]
        be = V[3 * i + 2: 3 * i + 3, :d_out]

        # Linear (MXU, f32 accumulate)
        x = jnp.dot(x[:, :d_in], w, preferred_element_type=jnp.float32) + b

        # LayerNorm (f32 VPU/EUP math — correct on v5e which lacks bf16 VPU)
        mean = jnp.mean(x, axis=-1, keepdims=True)
        var = jnp.mean((x - mean) ** 2, axis=-1, keepdims=True)
        x = (x - mean) * jax.lax.rsqrt(var + LN_EPS) * g + be

        # SiLU
        x = x * jax.nn.sigmoid(x)

    # Critic head: 1-wide output done on VPU (mul) + XLU (cross-lane sum)
    # instead of an (H, 1) MXU push.
    w_out = V[3 * num_hidden: 3 * num_hidden + 1, :head_dim]       # (1, head_dim)
    b_out = V[3 * num_hidden + 1: 3 * num_hidden + 2, 0:1]         # (1, 1)
    q = jnp.sum(x[:, :head_dim] * w_out, axis=-1, keepdims=True) + b_out
    o_ref[...] = q.astype(o_ref.dtype)


def ddpg_critic_forward(feature, action, params):
    """params: list of (W, b, gamma, beta) per hidden layer + final (W_out, b_out)."""
    num_hidden = len(params) - 1
    B = feature.shape[0]

    # Static per-layer dimensions.
    layer_dims = tuple((w.shape[0], w.shape[1]) for (w, _, _, _) in params[:-1])
    w_out, b_out = params[-1]
    head_dim = int(w_out.shape[0])

    h_max = max(d_out for _, d_out in layer_dims)
    h_max = max(h_max, head_dim)
    in_pad = _round_up(max(d_in for d_in, _ in layer_dims), 8)

    # --- Pack weights into one zero-padded slab: (L, IN_PAD, H_MAX) ---
    w_slab = jnp.zeros((num_hidden, in_pad, h_max), jnp.float32)
    for i, (w, _, _, _) in enumerate(params[:-1]):
        w_slab = w_slab.at[i, : w.shape[0], : w.shape[1]].set(w.astype(jnp.float32))

    # --- Pack all (1, H) vectors + head into one slab: (3L + 2, H_MAX) ---
    v_slab = jnp.zeros((3 * num_hidden + 2, h_max), jnp.float32)
    for i, (_, b, g, be) in enumerate(params[:-1]):
        v_slab = v_slab.at[3 * i + 0, : b.shape[0]].set(b.astype(jnp.float32))
        v_slab = v_slab.at[3 * i + 1, : g.shape[0]].set(g.astype(jnp.float32))
        v_slab = v_slab.at[3 * i + 2, : be.shape[0]].set(be.astype(jnp.float32))
    v_slab = v_slab.at[3 * num_hidden, :head_dim].set(
        w_out.reshape(-1).astype(jnp.float32))
    v_slab = v_slab.at[3 * num_hidden + 1, 0].set(
        b_out.reshape(-1)[0].astype(jnp.float32))

    # --- Pre-concatenate inputs in the wrapper; pad batch to multiple of 8 ---
    x = jnp.concatenate(
        [feature.astype(jnp.float32), action.astype(jnp.float32)], axis=1)
    b_pad = _round_up(B, 8)
    if b_pad != B:
        x = jnp.pad(x, ((0, b_pad - B), (0, 0)))

    vmem = pl.BlockSpec(memory_space=pltpu.MemorySpace.VMEM)
    kernel = functools.partial(_critic_kernel, layer_dims, head_dim)

    flops = 2 * b_pad * sum(d_in * d_out for d_in, d_out in layer_dims)
    flops += 2 * b_pad * head_dim
    transcendentals = b_pad * (sum(d_out for _, d_out in layer_dims) + num_hidden)
    bytes_accessed = 4 * (x.size + w_slab.size + v_slab.size + b_pad)

    q_pad = pl.pallas_call(
        kernel,
        out_shape=jax.ShapeDtypeStruct((b_pad, 1), jnp.float32),
        in_specs=[vmem, vmem, vmem],
        out_specs=vmem,
        cost_estimate=pl.CostEstimate(
            flops=flops,
            transcendentals=transcendentals,
            bytes_accessed=bytes_accessed,
        ),
    )(x, w_slab, v_slab)
    return q_pad[:B]


def init_params(key, state_dim, action_dim, hidden_dims):
    params = []
    in_dim = state_dim + action_dim
    for h in hidden_dims:
        key, kw, kb = jax.random.split(key, 3)
        bound = 1.0 / jnp.sqrt(in_dim)
        w = jax.random.uniform(kw, (in_dim, h), jnp.float32, -bound, bound)
        b = jax.random.uniform(kb, (h,), jnp.float32, -bound, bound)
        gamma = jnp.ones((h,), jnp.float32)
        beta = jnp.zeros((h,), jnp.float32)
        params.append((w, b, gamma, beta))
        in_dim = h
    key, kw, kb = jax.random.split(key, 3)
    bound = 1.0 / jnp.sqrt(in_dim)
    w_out = jax.random.uniform(kw, (in_dim, 1), jnp.float32, -bound, bound)
    b_out = jax.random.uniform(kb, (1,), jnp.float32, -bound, bound)
    params.append((w_out, b_out))
    return params


def reference_forward(feature, action, params):
    x = jnp.concatenate([feature, action], axis=1)
    for (w, b, g, be) in params[:-1]:
        x = x @ w + b
        mean = jnp.mean(x, axis=-1, keepdims=True)
        var = jnp.mean((x - mean) ** 2, axis=-1, keepdims=True)
        x = (x - mean) * jax.lax.rsqrt(var + LN_EPS) * g + be
        x = x * jax.nn.sigmoid(x)
    w_out, b_out = params[-1]
    return x @ w_out + b_out


if __name__ == "__main__":
    key = jax.random.PRNGKey(0)
    B, state_dim, action_dim = 4, 16, 8
    hidden_dims = [32, 32]

    key, kf, ka, kp = jax.random.split(key, 4)
    feature = jax.random.normal(kf, (B, state_dim), jnp.float32)
    action = jax.random.normal(ka, (B, action_dim), jnp.float32)
    params = init_params(kp, state_dim, action_dim, hidden_dims)

    q = ddpg_critic_forward(feature, action, params)
    jax.block_until_ready(q)

    q_ref = reference_forward(feature, action, params)
    assert q.shape == (B, 1)
    assert jnp.allclose(q, q_ref, atol=1e-4, rtol=1e-4), (q, q_ref)
    print("KERNEL_OK")
</pallas_src>

<mosaic_0001>
module attributes {stable_mosaic.version = 11 : i64} {
  func.func @_critic_kernel(%arg0: memref<8x24xf32, #tpu.memory_space<vmem>>, %arg1: memref<2x32x32xf32, #tpu.memory_space<vmem>>, %arg2: memref<8x32xf32, #tpu.memory_space<vmem>>, %arg3: memref<8x1xf32, #tpu.memory_space<vmem>>) attributes {dimension_semantics = [], scalar_prefetch = 0 : i64, scratch_operands = 0 : i64, tpu.core_type = #tpu.core_type<tc>} {
    %c0 = arith.constant 0 : index
    %c0_0 = arith.constant 0 : index
    %0 = vector.load %arg0[%c0, %c0_0] : memref<8x24xf32, #tpu.memory_space<vmem>>, vector<8x24xf32>
    %c0_1 = arith.constant 0 : index
    %c0_2 = arith.constant 0 : index
    %c0_3 = arith.constant 0 : index
    %1 = vector.load %arg1[%c0_1, %c0_2, %c0_3] : memref<2x32x32xf32, #tpu.memory_space<vmem>>, vector<2x32x32xf32>
    %c0_4 = arith.constant 0 : index
    %c0_5 = arith.constant 0 : index
    %2 = vector.load %arg2[%c0_4, %c0_5] : memref<8x32xf32, #tpu.memory_space<vmem>>, vector<8x32xf32>
    %3 = vector.extract_strided_slice %1 {offsets = [0, 0, 0], sizes = [1, 24, 32], strides = [1, 1, 1]} : vector<2x32x32xf32> to vector<1x24x32xf32>
    %4 = vector.shape_cast %3 : vector<1x24x32xf32> to vector<24x32xf32>
    %5 = vector.extract_strided_slice %2 {offsets = [0, 0], sizes = [1, 32], strides = [1, 1]} : vector<8x32xf32> to vector<1x32xf32>
    %6 = vector.extract_strided_slice %2 {offsets = [1, 0], sizes = [1, 32], strides = [1, 1]} : vector<8x32xf32> to vector<1x32xf32>
    %7 = vector.extract_strided_slice %2 {offsets = [2, 0], sizes = [1, 32], strides = [1, 1]} : vector<8x32xf32> to vector<1x32xf32>
    %cst = arith.constant dense<0.000000e+00> : vector<8x32xf32>
    %8 = tpu.matmul %0, %4, %cst {dimension_numbers = #tpu.dot_dimension_numbers<[1], [0], [0], [1], [0, 0, 1, 1], [], []>} : vector<8x24xf32>, vector<24x32xf32>, vector<8x32xf32> -> vector<8x32xf32>
    %9 = vector.broadcast %5 : vector<1x32xf32> to vector<8x32xf32>
    %10 = arith.addf %8, %9 : vector<8x32xf32>
    %cst_6 = arith.constant dense<0.000000e+00> : vector<8xf32>
    %11 = vector.multi_reduction <add>, %10, %cst_6 [1] : vector<8x32xf32> to vector<8xf32>
    %12 = vector.shape_cast %11 : vector<8xf32> to vector<8x1xf32>
    %cst_7 = arith.constant 3.200000e+01 : f32
    %13 = vector.broadcast %cst_7 : f32 to vector<8x1xf32>
    %14 = arith.divf %12, %13 : vector<8x1xf32>
    %15 = vector.broadcast %14 : vector<8x1xf32> to vector<8x32xf32>
    %16 = arith.subf %10, %15 : vector<8x32xf32>
    %17 = arith.mulf %16, %16 : vector<8x32xf32>
    %cst_8 = arith.constant dense<0.000000e+00> : vector<8xf32>
    %18 = vector.multi_reduction <add>, %17, %cst_8 [1] : vector<8x32xf32> to vector<8xf32>
    %19 = vector.shape_cast %18 : vector<8xf32> to vector<8x1xf32>
    %cst_9 = arith.constant 3.200000e+01 : f32
    %20 = vector.broadcast %cst_9 : f32 to vector<8x1xf32>
    %21 = arith.divf %19, %20 : vector<8x1xf32>
    %22 = vector.broadcast %14 : vector<8x1xf32> to vector<8x32xf32>
    %23 = arith.subf %10, %22 : vector<8x32xf32>
    %cst_10 = arith.constant 9.99999974E-6 : f32
    %24 = vector.broadcast %cst_10 : f32 to vector<8x1xf32>
    %25 = arith.addf %21, %24 : vector<8x1xf32>
    %26 = math.rsqrt %25 : vector<8x1xf32>
    %27 = vector.broadcast %26 : vector<8x1xf32> to vector<8x32xf32>
    %28 = arith.mulf %23, %27 : vector<8x32xf32>
    %29 = vector.broadcast %6 : vector<1x32xf32> to vector<8x32xf32>
    %30 = arith.mulf %28, %29 : vector<8x32xf32>
    %31 = vector.broadcast %7 : vector<1x32xf32> to vector<8x32xf32>
    %32 = arith.addf %30, %31 : vector<8x32xf32>
    %33 = arith.negf %32 : vector<8x32xf32>
    %34 = math.exp %33 : vector<8x32xf32>
    %cst_11 = arith.constant 1.000000e+00 : f32
    %35 = vector.broadcast %cst_11 : f32 to vector<8x32xf32>
    %36 = arith.addf %35, %34 : vector<8x32xf32>
    %37 = arith.divf %35, %36 : vector<8x32xf32>
    %38 = arith.mulf %32, %37 : vector<8x32xf32>
    %39 = vector.extract_strided_slice %1 {offsets = [1, 0, 0], sizes = [1, 32, 32], strides = [1, 1, 1]} : vector<2x32x32xf32> to vector<1x32x32xf32>
    %40 = vector.shape_cast %39 : vector<1x32x32xf32> to vector<32x32xf32>
    %41 = vector.extract_strided_slice %2 {offsets = [3, 0], sizes = [1, 32], strides = [1, 1]} : vector<8x32xf32> to vector<1x32xf32>
    %42 = vector.extract_strided_slice %2 {offsets = [4, 0], sizes = [1, 32], strides = [1, 1]} : vector<8x32xf32> to vector<1x32xf32>
    %43 = vector.extract_strided_slice %2 {offsets = [5, 0], sizes = [1, 32], strides = [1, 1]} : vector<8x32xf32> to vector<1x32xf32>
    %cst_12 = arith.constant dense<0.000000e+00> : vector<8x32xf32>
    %44 = tpu.matmul %38, %40, %cst_12 {dimension_numbers = #tpu.dot_dimension_numbers<[1], [0], [0], [1], [0, 0, 1, 1], [], []>} : vector<8x32xf32>, vector<32x32xf32>, vector<8x32xf32> -> vector<8x32xf32>
    %45 = vector.broadcast %41 : vector<1x32xf32> to vector<8x32xf32>
    %46 = arith.addf %44, %45 : vector<8x32xf32>
    %cst_13 = arith.constant dense<0.000000e+00> : vector<8xf32>
    %47 = vector.multi_reduction <add>, %46, %cst_13 [1] : vector<8x32xf32> to vector<8xf32>
    %48 = vector.shape_cast %47 : vector<8xf32> to vector<8x1xf32>
    %cst_14 = arith.constant 3.200000e+01 : f32
    %49 = vector.broadcast %cst_14 : f32 to vector<8x1xf32>
    %50 = arith.divf %48, %49 : vector<8x1xf32>
    %51 = vector.broadcast %50 : vector<8x1xf32> to vector<8x32xf32>
    %52 = arith.subf %46, %51 : vector<8x32xf32>
    %53 = arith.mulf %52, %52 : vector<8x32xf32>
    %cst_15 = arith.constant dense<0.000000e+00> : vector<8xf32>
    %54 = vector.multi_reduction <add>, %53, %cst_15 [1] : vector<8x32xf32> to vector<8xf32>
    %55 = vector.shape_cast %54 : vector<8xf32> to vector<8x1xf32>
    %cst_16 = arith.constant 3.200000e+01 : f32
    %56 = vector.broadcast %cst_16 : f32 to vector<8x1xf32>
    %57 = arith.divf %55, %56 : vector<8x1xf32>
    %58 = vector.broadcast %50 : vector<8x1xf32> to vector<8x32xf32>
    %59 = arith.subf %46, %58 : vector<8x32xf32>
    %cst_17 = arith.constant 9.99999974E-6 : f32
    %60 = vector.broadcast %cst_17 : f32 to vector<8x1xf32>
    %61 = arith.addf %57, %60 : vector<8x1xf32>
    %62 = math.rsqrt %61 : vector<8x1xf32>
    %63 = vector.broadcast %62 : vector<8x1xf32> to vector<8x32xf32>
    %64 = arith.mulf %59, %63 : vector<8x32xf32>
    %65 = vector.broadcast %42 : vector<1x32xf32> to vector<8x32xf32>
    %66 = arith.mulf %64, %65 : vector<8x32xf32>
    %67 = vector.broadcast %43 : vector<1x32xf32> to vector<8x32xf32>
    %68 = arith.addf %66, %67 : vector<8x32xf32>
    %69 = arith.negf %68 : vector<8x32xf32>
    %70 = math.exp %69 : vector<8x32xf32>
    %cst_18 = arith.constant 1.000000e+00 : f32
    %71 = vector.broadcast %cst_18 : f32 to vector<8x32xf32>
    %72 = arith.addf %71, %70 : vector<8x32xf32>
    %73 = arith.divf %71, %72 : vector<8x32xf32>
    %74 = arith.mulf %68, %73 : vector<8x32xf32>
    %75 = vector.extract_strided_slice %2 {offsets = [6, 0], sizes = [1, 32], strides = [1, 1]} : vector<8x32xf32> to vector<1x32xf32>
    %76 = vector.extract_strided_slice %2 {offsets = [7, 0], sizes = [1, 1], strides = [1, 1]} : vector<8x32xf32> to vector<1x1xf32>
    %77 = vector.broadcast %75 : vector<1x32xf32> to vector<8x32xf32>
    %78 = arith.mulf %74, %77 : vector<8x32xf32>
    %cst_19 = arith.constant dense<0.000000e+00> : vector<8xf32>
    %79 = vector.multi_reduction <add>, %78, %cst_19 [1] : vector<8x32xf32> to vector<8xf32>
    %80 = vector.shape_cast %79 : vector<8xf32> to vector<8x1xf32>
    %81 = vector.broadcast %76 : vector<1x1xf32> to vector<8x1xf32>
    %82 = arith.addf %80, %81 : vector<8x1xf32>
    %c0_20 = arith.constant 0 : index
    %c0_21 = arith.constant 0 : index
    %83 = vector.load %arg3[%c0_20, %c0_21] : memref<8x1xf32, #tpu.memory_space<vmem>>, vector<8x1xf32>
    tpu.vector_store %arg3[%c0_20, %c0_21], %82 {strides = array<i32>} : memref<8x1xf32, #tpu.memory_space<vmem>>, vector<8x1xf32>,
    return
  }
}

</mosaic_0001>

<bundles_post_ra>
// kernel: tpu_custom_call.1
= control target key start
LH: loop header
LB: loop body
LE: loop exit
PB: predicated region body
PF: predicated region fallthrough
CT: control target
= control target key end

     0   :  { %8 = vsyncpa [#allocation3], 0  ;;  %s523_s0 = inlined_call_operand.hbm [shape: f32[8,24], index: 0, kind: input, shape index: {}]   ;;  %s524_s1 = inlined_call_operand.hbm [shape: f32[2,32,32], index: 1, kind: input, shape index: {}]   ;;  %s525_s2 = inlined_call_operand.hbm [shape: f32[8,32], index: 2, kind: input, shape index: {}]   ;;  %s526_s3 = inlined_call_operand.vmem [shape: f32[8,1], index: 3, kind: output, shape index: {}]  }
   0x1   :  { %9 = vsyncpa [#allocation5], 0  ;;  %s430_s12 = smov [#allocation4]   ;;  %s360_s16 = scalar_lea.hbm %s524_s1, 1024 }
   0x2   :  { %s25_s13 = sshll.u32 %s430_s12, 4  ;;  %p361_p0 = scmp.ne.s32.totalorder %s524_s1, %s360_s16  ;;  %s26_s13 = int_to_ptr.vmem [resolvable:$true] %s25_s13 }
   0x3   :  { %p364_p1 = scmp.lt.u32.totalorder %s360_s16, %s524_s1 }
   0x5   :  { %p366_p2 = pnand %p364_p1, %p361_p0 }
   0x7   :  { %369 = shalt.err (!%p366_p2)
}
   0x8   :  { %s370_s21 = scalar_lea.vmem %s26_s13, 1024  ;;  %p375_p4 = scmp.lt.s32.totalorder %s26_s13, %s26_s13 }
   0x9   :  { %p371_p3 = scmp.ne.s32.totalorder %s26_s13, %s370_s21  ;;  %p376_p5 = scmp.lt.s32.totalorder %s370_s21, %s370_s21 }
   0xb   :  { %p377_p6 = por %p376_p5, %p375_p4 }
   0xd   :  { %p378_p7 = pnand %p377_p6, %p371_p3 }
   0xf   :  { %381 = shalt.err (!%p378_p7)
}
  0x10   :  { %s431_s22 = smov 128   ;;  %s432_s23 = smov 8  }
  0x11   :  { %31 = dma.hbm_to_vmem [thread:$0]  %s524_s1, 1024, %s26_s13, [#allocation5], %s431_s22, %s431_s22, %s432_s23  }
  0x12   :  { %s433_s26 = smov [#allocation2]   ;;  %s434_s28 = smov [#allocation6]  }
  0x13   :  { %s16_s27 = sshll.u32 %s433_s26, 4  ;;  %s38_s29 = sshll.u32 %s434_s28, 4  ;;  %s17_s27 = int_to_ptr.vmem [resolvable:$true] %s16_s27  ;;  %s39_s29 = int_to_ptr.vmem [resolvable:$true] %s38_s29 }
  0x14   :  { %s382_s5 = scalar_lea.hbm %s523_s0, 128 }
  0x15   :  { %p383_p8 = scmp.ne.s32.totalorder %s523_s0, %s382_s5  ;;  %p386_p9 = scmp.lt.u32.totalorder %s382_s5, %s523_s0 }
  0x17   :  { %p388_p10 = pnand %p386_p9, %p383_p8 }
  0x19   :  { %391 = shalt.err (!%p388_p10)
}
  0x1a   :  { %s392_s1 = scalar_lea.vmem %s17_s27, 128  ;;  %p397_p12 = scmp.lt.s32.totalorder %s17_s27, %s17_s27 }
  0x1b   :  { %p393_p11 = scmp.ne.s32.totalorder %s17_s27, %s392_s1  ;;  %p398_p13 = scmp.lt.s32.totalorder %s392_s1, %s392_s1 }
  0x1d   :  { %p399_p0 = por %p398_p13, %p397_p12 }
  0x1f   :  { %p400_p1 = pnand %p399_p0, %p393_p11 }
  0x21   :  { %403 = shalt.err (!%p400_p1)
}
  0x22   :  { %19 = dma.hbm_to_vmem [thread:$0]  %s523_s0, 128, %s17_s27, [#allocation3]  }
  0x23   :  { %s404_s14 = scalar_lea.hbm %s525_s2, 128 }
  0x24   :  { %p405_p2 = scmp.ne.s32.totalorder %s525_s2, %s404_s14  ;;  %p408_p3 = scmp.lt.u32.totalorder %s404_s14, %s525_s2 }
  0x26   :  { %p410_p4 = pnand %p408_p3, %p405_p2 }
  0x28   :  { %413 = shalt.err (!%p410_p4)
}
  0x29   :  { %s414_s19 = scalar_lea.vmem %s39_s29, 128  ;;  %p419_p6 = scmp.lt.s32.totalorder %s39_s29, %s39_s29 }
  0x2a   :  { %p415_p5 = scmp.ne.s32.totalorder %s39_s29, %s414_s19  ;;  %p420_p7 = scmp.lt.s32.totalorder %s414_s19, %s414_s19 }
  0x2c   :  { %p421_p8 = por %p420_p7, %p419_p6 }
  0x2e   :  { %p422_p9 = pnand %p421_p8, %p415_p5 }
  0x30   :  { %425 = shalt.err (!%p422_p9)
}
  0x31   :  { %41 = dma.hbm_to_vmem [thread:$0]  %s525_s2, 128, %s39_s29, [#allocation5]  }
  0x32   :  { %426 = dma.done.wait [#allocation3], 128  }
  0x33   :  { %427 = vsyncadd [#allocation3], 4294967168 }
  0x34   :  { %428 = dma.done.wait [#allocation5], 1152  }
  0x35   :  { %429 = vsyncadd [#allocation5], 4294966144  ;;  %v435_v0 = vmov 0.0|0.0   ;;  %vm436_vm0 = vmmov 0   ;;  %v437_v1 = vmov 0.0   ;;  %v52_v2 = vld [vmem:[#allocation4] sm:$0xff]  ;;  %v60_v7 = vlaneseq }
  0x36   :  { %331 = vmatprep.subr.bf16.mxu0 %v435_v0  ;;  %317 = vmatprep.mubr.msk.f32.mxu0 %vm436_vm0, %v437_v1  ;;  %v53_v3 = vld [vmem:[#allocation4 + $0x8] sm:$0xff]  ;;  %v54_v5 = vld [vmem:[#allocation4 + $0x10] sm:$0xff]  ;;  %v51_v6 = vld [vmem:[#allocation2] sm:$0xff]  ;;  %vm64_vm1 = vcmask 195584   ;;  %vm138_vm2 = vcmask 261120   ;;  %vm290_vm3 = vcmask 7168  }
  0x37   :  { %334 = vmatprep.subr.bf16.mxu1 %v435_v0  ;;  %328 = vmatprep.mubr.msk.f32.mxu1 %vm436_vm0, %v437_v1  ;;  %v332_v4 = vpack.c.bf16 %v53_v3, %v52_v2  ;;  %v494_v8 = vshrl.u32 %v60_v7, 7  ;;  %v497_v10 = vld [vmem:[#allocation6] sm:$0xff]  ;;  %v56_v22 = vld [vmem:[#allocation4 + $0x28] sm:$0xff]  ;;  %v57_v23 = vld [vmem:[#allocation4 + $0x30] sm:$0xff] }
  0x38   :  { %v55_v21 = vld [vmem:[#allocation4 + $0x20] sm:$0xff]  ;;  %v58_v25 = vld [vmem:[#allocation4 + $0x38] sm:$0xff] }
  0x39   :  { %333 = vmatpush3.bf16.msra.mxu0 %v332_v4  ;;  %v62_v9 = vsub.s32 0, %v494_v8  ;;  %v335_v24 = vpack.c.bf16 %v56_v22, %v55_v21  ;;  %v338_v26 = vpack.c.bf16 %v58_v25, %v57_v23  ;;  %v155_v30 = vsub.s32 1, %v494_v8 }
  0x3a   :  { %315 = vmatprep.subr.mxu0 %v437_v1  ;;  %v160_v31 = vsub.s32 2, %v494_v8  ;;  %v172_v43 = vsub.s32 3, %v494_v8  ;;  %v262_v57 = vsub.s32 4, %v494_v8  ;;  %v267_v58 = vsub.s32 5, %v494_v8 }
  0x3b   :  { %v63_v11 = vrot.slane %v497_v10, %v62_v9  ;;  %336 = vmatpush3.bf16.msra.mxu1 %v335_v24  ;;  %v156_v32 = vrot.slane %v497_v10, %v155_v30  ;;  %v279_v4 = vsub.s32 6, %v494_v8 }
  0x3c   :  { %337 = vmatprep.subr.bf16.mxu1 %v435_v0  ;;  %v161_v35 = vrot.slane %v497_v10, %v160_v31  ;;  %v173_v44 = vrot.slane %v497_v10, %v172_v43  ;;  %v263_v59 = vrot.slane %v497_v10, %v262_v57  ;;  %v268_v62 = vrot.slane %v497_v10, %v267_v58 }
  0x3d   :  { %316 = vmatpush3.msra.mxu0 %v54_v5  ;;  %v280_v5 = vrot.slane %v497_v10, %v279_v4 }
  0x3e   :  { %318 = vmatmul.mubr.msk.f32.vlgmr.msra.gmra.mrb[0].mxu0 %vm64_vm1, %v51_v6 }
  0x3f   :  { %339 = vmatpush3.bf16.msra.mxu1 %v338_v26 }
 0x111   :  { %v134_v12 = vpop.f32.mrb[0].mxu0 }
 0x112   :  { %v135_v13 = vadd.f32 %v134_v12, %v63_v11  ;;  %v319_v14 = vpop.f32.mrb[1].mxu0  ;;  %v287_v12 = vsub.s32 7, %v494_v8 }
 0x114   :  { %v139_v15 = vsel %vm138_vm2, %v135_v13, 0.0 }
 0x115   :  { %140 = vadd.xlane.f32.xlu0 %v139_v15 }
 0x1a2   :  { %v141_v16 = vpop.xlane.xlu0 %140 }
 0x1a3   :  { %v143_v17 = vmul.f32 0.03125, %v141_v16 }
 0x1a5   :  { %v144_v18 = vsub.f32 %v135_v13, %v143_v17  ;;  %v288_v13 = vrot.slane %v497_v10, %v287_v12 }
 0x1a7   :  { %v145_v19 = vmul.f32 %v144_v18, %v144_v18 }
 0x1a9   :  { %v146_v20 = vsel %vm138_vm2, %v145_v19, 0.0 }
 0x1aa   :  { %147 = vadd.xlane.f32.xlu0 %v146_v20 }
 0x237   :  { %v148_v27 = vpop.xlane.xlu0 %147 }
 0x238   :  { %v149_v28 = vmul.f32 0.03125, %v148_v27 }
 0x23a   :  { %v150_v29 = vadd.f32 1e-05, %v149_v28 }
 0x23c   :  { %348 = vrsqrt.f32 %v150_v29 }
 0x246   :  { %v349_v33 = vpop.eup %348 }
 0x247   :  { %v152_v34 = vmul.f32 %v349_v33, %v144_v18 }
 0x249   :  { %v157_v36 = vmul.f32 %v156_v32, %v152_v34 }
 0x24b   :  { %v162_v37 = vadd.f32 %v161_v35, %v157_v36 }
 0x24d   :  { %v299_v38 = vmul.f32 -1.442695, %v162_v37 }
 0x24f   :  { %350 = vpow2.f32 %v299_v38 }
 0x259   :  { %v351_v39 = vpop.eup %350 }
 0x25a   :  { %v166_v40 = vadd.f32 1.0, %v351_v39 }
 0x25c   :  { %352 = vrcp.f32 %v166_v40 }
 0x266   :  { %v353_v41 = vpop.eup %352 }
 0x267   :  { %v169_v42 = vmul.f32 %v353_v41, %v162_v37 }
 0x269   :  { %329 = vmatmul.mubr.msk.f32.vlgmr.msra.gmra.mrb[0].mxu1 %vm138_vm2, %v169_v42 }
 0x33c   :  { %v243_v45 = vpop.f32.mrb[0].mxu1 }
 0x33d   :  { %v244_v46 = vadd.f32 %v243_v45, %v173_v44  ;;  %v330_v47 = vpop.f32.mrb[1].mxu1 }
 0x33f   :  { %v247_v48 = vsel %vm138_vm2, %v244_v46, 0.0 }
 0x340   :  { %248 = vadd.xlane.f32.xlu1 %v247_v48 }
 0x3cd   :  { %v249_v49 = vpop.xlane.xlu1 %248 }
 0x3ce   :  { %v250_v50 = vmul.f32 0.03125, %v249_v49 }
 0x3d0   :  { %v251_v51 = vsub.f32 %v244_v46, %v250_v50 }
 0x3d2   :  { %v252_v52 = vmul.f32 %v251_v51, %v251_v51 }
 0x3d4   :  { %v253_v53 = vsel %vm138_vm2, %v252_v52, 0.0 }
 0x3d5   :  { %254 = vadd.xlane.f32.xlu1 %v253_v53 }
 0x462   :  { %v255_v54 = vpop.xlane.xlu1 %254 }
 0x463   :  { %v256_v55 = vmul.f32 0.03125, %v255_v54 }
 0x465   :  { %v257_v56 = vadd.f32 1e-05, %v256_v55 }
 0x467   :  { %354 = vrsqrt.f32 %v257_v56 }
 0x471   :  { %v355_v60 = vpop.eup %354 }
 0x472   :  { %v259_v61 = vmul.f32 %v355_v60, %v251_v51 }
 0x474   :  { %v264_v63 = vmul.f32 %v263_v59, %v259_v61 }
 0x476   :  { %v269_v0 = vadd.f32 %v268_v62, %v264_v63 }
 0x478   :  { %v301_v1 = vmul.f32 -1.442695, %v269_v0 }
 0x47a   :  { %356 = vpow2.f32 %v301_v1 }
 0x484   :  { %v357_v2 = vpop.eup %356 }
 0x485   :  { %v273_v3 = vadd.f32 1.0, %v357_v2 }
 0x487   :  { %358 = vrcp.f32 %v273_v3 }
 0x491   :  { %v359_v6 = vpop.eup %358 }
 0x492   :  { %v276_v7 = vmul.f32 %v359_v6, %v269_v0 }
 0x494   :  { %v281_v9 = vmul.f32 %v280_v5, %v276_v7 }
 0x496   :  { %v282_v11 = vsel %vm138_vm2, %v281_v9, 0.0 }
 0x497   :  { %283 = vadd.xlane.f32.xlu0 %v282_v11 }
 0x524   :  { %v284_v14 = vpop.xlane.xlu0 %283 }
 0x525   :  { %v289_v15 = vadd.f32 %v288_v13, %v284_v14 }
 0x527   :  { %291 = vst.msk [vmem:[%s526_s3] sm:$0xff] %vm290_vm3, %v289_v15 }
 0x528   :  { %296 = vsyncpa [#allocation3], 1 }
 0x529   :  { %297 = vsyncpa [#allocation5], 1 }

</bundles_post_ra>
